<compile_context>
chip_gen: v7x
topology: tpu7x:2x2x1
jax: 0.10.0
libtpu: 0.0.40
codegen_flags: <defaults>
</compile_context>

<pallas_src>
import jax
import jax.numpy as jnp
from jax.experimental import pallas as pl
from jax.experimental.pallas import tpu as pltpu


# ---------------------------------------------------------------------------
# Pallas kernel: contiguous copy of one (rows, lanes) tile of the flattened view
# ---------------------------------------------------------------------------
def _flatten_copy_kernel(x_ref, o_ref):
    o_ref[...] = x_ref[...]


def _pick_lane_tile(N, tb, itemsize, budget_bytes=2 << 20):
    """Largest lane-tile that is either the full width N (always a legal block)
    or a multiple-of-128 divisor of N whose (tb, tn) tile fits the budget."""
    if tb * N * itemsize <= budget_bytes or N % 128 != 0:
        return N
    best = None
    for tn in range(128, N, 128):
        if N % tn == 0 and tb * tn * itemsize <= budget_bytes:
            best = tn
    return best if best is not None else N


def flatten(x):
    """Equivalent of torch: x.contiguous().view(x.size(0), -1)."""
    B = x.shape[0]
    N = 1
    for d in x.shape[1:]:
        N *= d

    # Row-major reshape == torch .view(B, -1) element order; metadata-only.
    x2 = x.reshape(B, N)

    # Row tile: full batch if it fits a vreg's sublane count, else 8 rows
    # (ragged last tile is masked by Pallas).  Lane tile: full width N when it
    # fits VMEM comfortably, otherwise a multiple-of-128 divisor of N.
    tb = B if B <= 8 else 8
    tn = _pick_lane_tile(N, tb, x2.dtype.itemsize)

    grid = (pl.cdiv(B, tb), N // tn)

    out = pl.pallas_call(
        _flatten_copy_kernel,
        out_shape=jax.ShapeDtypeStruct((B, N), x.dtype),
        grid_spec=pltpu.PrefetchScalarGridSpec(
            num_scalar_prefetch=0,
            grid=grid,
            in_specs=[pl.BlockSpec((tb, tn), lambda i, j: (i, j))],
            out_specs=pl.BlockSpec((tb, tn), lambda i, j: (i, j)),
        ),
        compiler_params=pltpu.CompilerParams(
            dimension_semantics=("parallel", "parallel")),
    )(x2)
    return out


if __name__ == "__main__":
    # Small shapes consistent with the module: batch=2, channels=4, 16x16 spatial.
    key = jax.random.PRNGKey(0)
    x = jax.random.normal(key, (2, 4, 16, 16), jnp.float32)

    fwd = jax.jit(flatten)
    out = jax.block_until_ready(fwd(x))

    assert out.shape == (2, 4 * 16 * 16), out.shape
    # Reference: torch's .view(B, -1) on a contiguous NCHW tensor is exactly a
    # row-major reshape.
    ref = x.reshape(2, -1)
    assert bool(jnp.array_equal(out, ref))
    assert bool(jnp.all(jnp.isfinite(out)))
    print("KERNEL_OK")
</pallas_src>

<mosaic_0001>
module attributes {stable_mosaic.version = 11 : i64} {
  func.func @_flatten_copy_kernel(%arg0: i32, %arg1: i32, %arg2: memref<2x1024xf32, #tpu.memory_space<vmem>>, %arg3: memref<2x1024xf32, #tpu.memory_space<vmem>>) attributes {dimension_semantics = [#tpu.dimension_semantics<parallel>, #tpu.dimension_semantics<parallel>], iteration_bounds = array<i64: 1, 1>, scalar_prefetch = 0 : i64, scratch_operands = 0 : i64, tpu.core_type = #tpu.core_type<tc>, window_params = [{transform_indices = @transform_0, window_bounds = array<i64: 2, 1024>}, {transform_indices = @transform_1, window_bounds = array<i64: 2, 1024>}]} {
    %c0 = arith.constant 0 : index
    %c0_0 = arith.constant 0 : index
    %0 = vector.load %arg2[%c0, %c0_0] : memref<2x1024xf32, #tpu.memory_space<vmem>>, vector<2x1024xf32>
    %c0_1 = arith.constant 0 : index
    %c0_2 = arith.constant 0 : index
    %1 = vector.load %arg3[%c0_1, %c0_2] : memref<2x1024xf32, #tpu.memory_space<vmem>>, vector<2x1024xf32>
    tpu.vector_store %arg3[%c0_1, %c0_2], %0 {strides = array<i32>} : memref<2x1024xf32, #tpu.memory_space<vmem>>, vector<2x1024xf32>,
    return
  }
  func.func @transform_0(%arg0: i32, %arg1: i32) -> (i32, i32) {
    %c0_i32 = arith.constant 0 : i32
    return %arg0, %arg1 : i32, i32
  }
  func.func @transform_1(%arg0: i32, %arg1: i32) -> (i32, i32) {
    %c0_i32 = arith.constant 0 : i32
    return %arg0, %arg1 : i32, i32
  }
}

</mosaic_0001>

<bundles_post_ra>
// kernel: flatten.1
= control target key start
LH: loop header
LB: loop body
LE: loop exit
PB: predicated region body
PF: predicated region fallthrough
CT: control target
= control target key end

     0   :  { %s81_s0 = inlined_call_operand.vmem [shape: f32[2,1024], index: 0, kind: input, shape index: {}]   ;;  %s82_s1 = inlined_call_operand.hbm [shape: f32[2,1024], index: 1, kind: output, shape index: {}]  }
   0x1   :  { %v9_v0 = vld [vmem:[%s81_s0] sm:$0xff]  ;;  %v10_v1 = vld [vmem:[%s81_s0 + $0x8] sm:$0xff] }
   0x2   :  { %6 = vsyncpa [#allocation3], 0  ;;  %11 = vst [vmem:[#allocation2] sm:$0xff] %v9_v0  ;;  %s52_s10 = smov [#allocation2]  }
   0x3   :  { %12 = vst [vmem:[#allocation2 + $0x8] sm:$0xff] %v10_v1  ;;  %s19_s11 = sshll.u32 %s52_s10, 4  ;;  %s20_s11 = int_to_ptr.vmem [resolvable:$true] %s19_s11 }
   0x4   :  { %s28_s12 = scalar_lea.vmem %s20_s11, 256  ;;  %p33_p1 = scmp.lt.s32.totalorder %s20_s11, %s20_s11 }
   0x5   :  { %p29_p0 = scmp.ne.s32.totalorder %s20_s11, %s28_s12  ;;  %p34_p2 = scmp.lt.s32.totalorder %s28_s12, %s28_s12 }
   0x7   :  { %p35_p3 = por %p34_p2, %p33_p1 }
   0x9   :  { %p36_p4 = pnand %p35_p3, %p29_p0 }
   0xb   :  { %39 = shalt.err (!%p36_p4)
}
   0xc   :  { %s40_s15 = scalar_lea.hbm %s82_s1, 256 }
   0xd   :  { %p41_p5 = scmp.ne.s32.totalorder %s82_s1, %s40_s15  ;;  %p44_p6 = scmp.lt.u32.totalorder %s40_s15, %s82_s1 }
   0xf   :  { %p46_p7 = pnand %p44_p6, %p41_p5 }
  0x11   :  { %49 = shalt.err (!%p46_p7)
}
  0x12   :  { %22 = dma.vmem_to_hbm [thread:$0]  %s20_s11, 256, %s82_s1, [#allocation3]  }
  0x13   :  { %50 = dma.done.wait [#allocation3], 256  }
  0x14   :  { %51 = vsyncadd [#allocation3], 4294967040 }
  0x15   :  { %26 = vsyncpa [#allocation3], 1 }

</bundles_post_ra>
